<compile_context>
chip_gen: v7x
topology: tpu7x:2x2x1
jax: 0.10.0
libtpu: 0.0.40
codegen_flags: <defaults>
</compile_context>

<pallas_src>
import numpy as np
import jax
import jax.numpy as jnp
from jax.experimental import pallas as pl
from jax.experimental.pallas import tpu as pltpu

LANES = 128          # lane-dense width of every activation / weight slab
MAX_TILE_B = 2048    # batch-tile cap (DMA size vs per-step-overhead sweet spot)


def _round_up(a, m):
    return -(-a // m) * m


def _choose_tiling(batch):
    """Pick (tile_b, b_pad).

    tile_b is a multiple of 8 (sublane rule), capped at MAX_TILE_B.  For any
    batch above 8 rows we aim for >=2 tiles so dimension_semantics=("parallel",)
    can shard the grid across both v7x TensorCores; tiny batches pad only to
    the 8-row minimum instead of a huge fixed tile.
    """
    b8 = _round_up(max(batch, 1), 8)
    tile = min(MAX_TILE_B, max(8, _round_up(b8 // 2, 8)))
    b_pad = tile * (-(-b8 // tile))
    return tile, b_pad


# ----------------------------------------------------------------------------
# Pallas kernel: whole Generator forward for one batch tile.
# ----------------------------------------------------------------------------
def _make_generator_kernel(n_sub, sub_rows):
    def kernel(x_ref, w1_ref, w2_ref, w3_ref, m1_ref, m2_ref, m3_ref,
               b_ref, out_ref):
        # x_ref:  (tile_b, input_dim) bf16
        # w1_ref: (input_dim, 128) bf16; w2..m3: (128, 128) bf16 (zero padded)
        # b_ref:  (8, 128) f32 — one bias row per stage
        # out_ref: (tile_b, 128) bf16
        w1 = w1_ref[...]; w2 = w2_ref[...]; w3 = w3_ref[...]
        m1 = m1_ref[...]; m2 = m2_ref[...]; m3 = m3_ref[...]
        b1 = b_ref[0:1, :]; b2 = b_ref[1:2, :]; b3 = b_ref[2:3, :]
        c1 = b_ref[3:4, :]; c2 = b_ref[4:5, :]; c3 = b_ref[5:6, :]
        bf16 = jnp.bfloat16

        # Static unroll over independent row sub-chunks: two interleavable
        # dependent matmul chains keep the MXU fed between stages.
        for s in range(n_sub):
            rows = pl.ds(s * sub_rows, sub_rows)
            x = x_ref[rows, :]
            # fc_layers: Linear(+f32 bias row) -> ReLU   (x3)
            h = jnp.maximum(
                jnp.dot(x, w1, preferred_element_type=jnp.float32) + b1, 0.0)
            h = jnp.maximum(
                jnp.dot(h.astype(bf16), w2, preferred_element_type=jnp.float32) + b2, 0.0)
            h = jnp.maximum(
                jnp.dot(h.astype(bf16), w3, preferred_element_type=jnp.float32) + b3, 0.0)
            # view(B, C, 1) -> row-major flatten is the identity on this layout.
            # deconv stage 1: Upsample(2) + ConvTranspose1d + ReLU (folded matrix)
            h = jnp.maximum(
                jnp.dot(h.astype(bf16), m1, preferred_element_type=jnp.float32) + c1, 0.0)
            # deconv stage 2: Upsample(2) + ConvTranspose1d + ReLU
            h = jnp.maximum(
                jnp.dot(h.astype(bf16), m2, preferred_element_type=jnp.float32) + c2, 0.0)
            # deconv stage 3: ConvTranspose1d + Tanh
            y = jnp.dot(h.astype(bf16), m3, preferred_element_type=jnp.float32) + c3
            out_ref[rows, :] = jnp.tanh(y).astype(out_ref.dtype)
    return kernel


def generator_forward(x, params, final_len):
    """x: (B, input_dim) f32. params: w1 (input_dim,128) + 5x (128,128) bf16
    weight slabs and an (8,128) f32 bias-row matrix. Returns (B,1,final_len) f32."""
    w1, w2, w3, m1, m2, m3, biases = params
    B, in_dim = x.shape
    tile_b, b_pad = _choose_tiling(B)
    n_sub = 2 if (tile_b >= 256 and tile_b % 16 == 0) else 1
    sub_rows = tile_b // n_sub

    # Narrow, batch-padded bf16 input (no 128-lane host padding pass).
    xp = jnp.pad(x.astype(jnp.bfloat16), ((0, b_pad - B), (0, 0)))

    w_full = pl.BlockSpec((LANES, LANES), lambda i: (0, 0))      # VMEM-resident
    y = pl.pallas_call(
        _make_generator_kernel(n_sub, sub_rows),
        out_shape=jax.ShapeDtypeStruct((b_pad, LANES), jnp.bfloat16),
        grid=(b_pad // tile_b,),
        in_specs=[
            pl.BlockSpec((tile_b, in_dim), lambda i: (i, 0)),    # x tile
            pl.BlockSpec((in_dim, LANES), lambda i: (0, 0)),     # w1 (narrow K)
            w_full, w_full, w_full, w_full, w_full,               # w2,w3,m1,m2,m3
            pl.BlockSpec((8, LANES), lambda i: (0, 0)),          # f32 bias rows
        ],
        out_specs=pl.BlockSpec((tile_b, LANES), lambda i: (i, 0)),
        compiler_params=pltpu.CompilerParams(
            dimension_semantics=("parallel",)),
    )(xp, w1, w2, w3, m1, m2, m3, biases)

    # Drop batch/lane padding; tiny cast back to f32; back to NCL (B, 1, L).
    return y[:B, :final_len].astype(jnp.float32).reshape(B, 1, final_len)


# ----------------------------------------------------------------------------
# Setup glue: fold (nearest Upsample x u) + ConvTranspose1d into a dense matrix
# acting on the row-major-flattened (C_in*L_in) -> (C_out*L_out) features.
# ----------------------------------------------------------------------------
def build_upsample_convt_matrix(weight, L_in, upsample, stride=2, padding=1):
    # weight: PyTorch ConvTranspose1d layout (C_in, C_out, K)
    C_in, C_out, K = weight.shape
    L_up = L_in * upsample
    L_out = (L_up - 1) * stride - 2 * padding + K
    M = np.zeros((C_in * L_in, C_out * L_out), dtype=np.float32)
    for ci in range(C_in):
        for l in range(L_in):
            for j in range(L_up):
                if j // upsample != l:          # nearest upsample: up[j] = in[j // u]
                    continue
                for k in range(K):
                    o = j * stride - padding + k
                    if 0 <= o < L_out:
                        for co in range(C_out):
                            M[ci * L_in + l, co * L_out + o] += weight[ci, co, k]
    return M, L_out


def pad_weight(w, rows=LANES, cols=LANES):
    """Zero-pad a (K_in, K_out) weight into a (rows, cols) lane-dense slab."""
    k_in, k_out = w.shape
    # Scalability limit: every flattened feature width must fit one 128-lane slab.
    assert k_in <= rows and k_out <= cols, (k_in, k_out)
    slab = np.zeros((rows, cols), dtype=np.float32)
    slab[:k_in, :k_out] = w
    return slab


def build_bias_rows(bias_vectors, size=LANES):
    """Stack per-stage bias vectors (zero-padded to 128 lanes) into (8,128) f32."""
    mat = np.zeros((8, size), dtype=np.float32)
    for r, b in enumerate(bias_vectors):
        b = np.asarray(b, dtype=np.float32)
        assert b.shape[0] <= size
        mat[r, :b.shape[0]] = b
    return mat


# ----------------------------------------------------------------------------
# Independent numpy reference (mirrors PyTorch semantics directly).
# ----------------------------------------------------------------------------
def np_conv_transpose1d(x, w, b, stride=2, padding=1):
    B, C_in, L_in = x.shape
    _, C_out, K = w.shape
    L_out = (L_in - 1) * stride - 2 * padding + K
    out = np.zeros((B, C_out, L_out), dtype=np.float32)
    for bb in range(B):
        for ci in range(C_in):
            for l in range(L_in):
                for k in range(K):
                    o = l * stride - padding + k
                    if 0 <= o < L_out:
                        out[bb, :, o] += x[bb, ci, l] * w[ci, :, k]
    return out + b[None, :, None]


def reference_forward(x, fc, conv):
    w1, b1, w2, b2, w3, b3 = fc
    h = np.maximum(x @ w1 + b1, 0.0)
    h = np.maximum(h @ w2 + b2, 0.0)
    h = np.maximum(h @ w3 + b3, 0.0)
    h = h.reshape(h.shape[0], -1, 1)
    (cw1, cb1), (cw2, cb2), (cw3, cb3) = conv
    h = np.repeat(h, 2, axis=2)                                # Upsample(2)
    h = np.maximum(np_conv_transpose1d(h, cw1, cb1), 0.0)      # ConvT + ReLU
    h = np.repeat(h, 2, axis=2)                                # Upsample(2)
    h = np.maximum(np_conv_transpose1d(h, cw2, cb2), 0.0)      # ConvT + ReLU
    h = np.tanh(np_conv_transpose1d(h, cw3, cb3))              # ConvT + Tanh
    return h


if __name__ == "__main__":
    # GANConfig equivalent (small, deterministic)
    input_dim = 32
    feature_dim = 4
    batch = 2
    fd = feature_dim

    key = jax.random.PRNGKey(0)
    ks = jax.random.split(key, 14)

    def init(k, shape, scale=0.1):
        return scale * jax.random.normal(k, shape, dtype=jnp.float32)

    # fc_layers parameters (stored as (in, out) so forward is x @ W + b)
    w1 = init(ks[0], (input_dim, fd * 16)); b1 = init(ks[1], (fd * 16,))
    w2 = init(ks[2], (fd * 16, fd * 8));    b2 = init(ks[3], (fd * 8,))
    w3 = init(ks[4], (fd * 8, fd * 4));     b3 = init(ks[5], (fd * 4,))
    # ConvTranspose1d parameters in PyTorch layout (C_in, C_out, K)
    cw1 = init(ks[6], (fd * 4, fd * 2, 4)); cb1 = init(ks[7], (fd * 2,))
    cw2 = init(ks[8], (fd * 2, fd, 4));     cb2 = init(ks[9], (fd,))
    cw3 = init(ks[10], (fd, 1, 4));         cb3 = init(ks[11], (1,))

    # Fold deconv stages into dense matrices (setup glue, not the hot path)
    m1_np, L1 = build_upsample_convt_matrix(np.asarray(cw1), L_in=1, upsample=2)   # (16, 32)
    m2_np, L2 = build_upsample_convt_matrix(np.asarray(cw2), L_in=L1, upsample=2)  # (32, 64)
    m3_np, L3 = build_upsample_convt_matrix(np.asarray(cw3), L_in=L2, upsample=1)  # (64, 32)
    c1_np = np.repeat(np.asarray(cb1), L1).astype(np.float32)
    c2_np = np.repeat(np.asarray(cb2), L2).astype(np.float32)
    c3_np = np.repeat(np.asarray(cb3), L3).astype(np.float32)

    to_bf16 = lambda a: jnp.asarray(a, dtype=jnp.bfloat16)
    params = (
        to_bf16(pad_weight(np.asarray(w1), rows=input_dim)),   # (32, 128)
        to_bf16(pad_weight(np.asarray(w2))),                    # (128, 128)
        to_bf16(pad_weight(np.asarray(w3))),
        to_bf16(pad_weight(m1_np)),
        to_bf16(pad_weight(m2_np)),
        to_bf16(pad_weight(m3_np)),
        jnp.asarray(build_bias_rows(
            [np.asarray(b1), np.asarray(b2), np.asarray(b3),
             c1_np, c2_np, c3_np]), dtype=jnp.float32),         # (8, 128) f32
    )

    fc_np = tuple(np.asarray(a) for a in (w1, b1, w2, b2, w3, b3))
    conv_np = ((np.asarray(cw1), np.asarray(cb1)),
               (np.asarray(cw2), np.asarray(cb2)),
               (np.asarray(cw3), np.asarray(cb3)))

    # --- small batch (single 8-row tile, n_sub=1) ---------------------------
    x_small = jax.random.normal(ks[12], (batch, input_dim), dtype=jnp.float32)
    out_small = jax.block_until_ready(generator_forward(x_small, params, final_len=L3))
    assert out_small.shape == (batch, 1, L3), out_small.shape
    ref_small = reference_forward(np.asarray(x_small), fc_np, conv_np)
    np.testing.assert_allclose(np.asarray(out_small), ref_small, rtol=2e-2, atol=2e-2)

    # --- larger batch (2 parallel tiles, 2 interleaved sub-chains per tile) --
    big = 512
    x_big = jax.random.normal(ks[13], (big, input_dim), dtype=jnp.float32)
    out_big = jax.block_until_ready(generator_forward(x_big, params, final_len=L3))
    assert out_big.shape == (big, 1, L3), out_big.shape
    ref_big = reference_forward(np.asarray(x_big), fc_np, conv_np)
    np.testing.assert_allclose(np.asarray(out_big), ref_big, rtol=2e-2, atol=2e-2)

    print("KERNEL_OK")
</pallas_src>

<mosaic_0001>
module attributes {stable_mosaic.version = 11 : i64} {
  func.func @kernel(%arg0: i32, %arg1: memref<8x32xbf16, #tpu.memory_space<vmem>>, %arg2: memref<32x128xbf16, #tpu.memory_space<vmem>>, %arg3: memref<128x128xbf16, #tpu.memory_space<vmem>>, %arg4: memref<128x128xbf16, #tpu.memory_space<vmem>>, %arg5: memref<128x128xbf16, #tpu.memory_space<vmem>>, %arg6: memref<128x128xbf16, #tpu.memory_space<vmem>>, %arg7: memref<128x128xbf16, #tpu.memory_space<vmem>>, %arg8: memref<8x128xf32, #tpu.memory_space<vmem>>, %arg9: memref<8x128xbf16, #tpu.memory_space<vmem>>) attributes {dimension_semantics = [#tpu.dimension_semantics<parallel>], iteration_bounds = array<i64: 1>, scalar_prefetch = 0 : i64, scratch_operands = 0 : i64, tpu.core_type = #tpu.core_type<tc>, window_params = [{transform_indices = @transform_0, window_bounds = array<i64: 8, 32>}, {pipeline_mode = #tpu.pipeline_mode<synchronous>, transform_indices = @transform_1, window_bounds = array<i64: 32, 128>}, {pipeline_mode = #tpu.pipeline_mode<synchronous>, transform_indices = @transform_2, window_bounds = array<i64: 128, 128>}, {pipeline_mode = #tpu.pipeline_mode<synchronous>, transform_indices = @transform_3, window_bounds = array<i64: 128, 128>}, {pipeline_mode = #tpu.pipeline_mode<synchronous>, transform_indices = @transform_4, window_bounds = array<i64: 128, 128>}, {pipeline_mode = #tpu.pipeline_mode<synchronous>, transform_indices = @transform_5, window_bounds = array<i64: 128, 128>}, {pipeline_mode = #tpu.pipeline_mode<synchronous>, transform_indices = @transform_6, window_bounds = array<i64: 128, 128>}, {pipeline_mode = #tpu.pipeline_mode<synchronous>, transform_indices = @transform_7, window_bounds = array<i64: 8, 128>}, {transform_indices = @transform_8, window_bounds = array<i64: 8, 128>}]} {
    %c0 = arith.constant 0 : index
    %c0_0 = arith.constant 0 : index
    %0 = vector.load %arg2[%c0, %c0_0] : memref<32x128xbf16, #tpu.memory_space<vmem>>, vector<32x128xbf16>
    %c0_1 = arith.constant 0 : index
    %c0_2 = arith.constant 0 : index
    %1 = vector.load %arg3[%c0_1, %c0_2] : memref<128x128xbf16, #tpu.memory_space<vmem>>, vector<128x128xbf16>
    %c0_3 = arith.constant 0 : index
    %c0_4 = arith.constant 0 : index
    %2 = vector.load %arg4[%c0_3, %c0_4] : memref<128x128xbf16, #tpu.memory_space<vmem>>, vector<128x128xbf16>
    %c0_5 = arith.constant 0 : index
    %c0_6 = arith.constant 0 : index
    %3 = vector.load %arg5[%c0_5, %c0_6] : memref<128x128xbf16, #tpu.memory_space<vmem>>, vector<128x128xbf16>
    %c0_7 = arith.constant 0 : index
    %c0_8 = arith.constant 0 : index
    %4 = vector.load %arg6[%c0_7, %c0_8] : memref<128x128xbf16, #tpu.memory_space<vmem>>, vector<128x128xbf16>
    %c0_9 = arith.constant 0 : index
    %c0_10 = arith.constant 0 : index
    %5 = vector.load %arg7[%c0_9, %c0_10] : memref<128x128xbf16, #tpu.memory_space<vmem>>, vector<128x128xbf16>
    %c0_11 = arith.constant 0 : index
    %c0_12 = arith.constant 0 : index
    %6 = vector.load %arg8[%c0_11, %c0_12] : memref<8x128xf32, #tpu.memory_space<vmem>>, vector<1x128xf32>
    %c1 = arith.constant 1 : index
    %c0_13 = arith.constant 0 : index
    %7 = vector.load %arg8[%c1, %c0_13] : memref<8x128xf32, #tpu.memory_space<vmem>>, vector<1x128xf32>
    %c2 = arith.constant 2 : index
    %c0_14 = arith.constant 0 : index
    %8 = vector.load %arg8[%c2, %c0_14] : memref<8x128xf32, #tpu.memory_space<vmem>>, vector<1x128xf32>
    %c3 = arith.constant 3 : index
    %c0_15 = arith.constant 0 : index
    %9 = vector.load %arg8[%c3, %c0_15] : memref<8x128xf32, #tpu.memory_space<vmem>>, vector<1x128xf32>
    %c4 = arith.constant 4 : index
    %c0_16 = arith.constant 0 : index
    %10 = vector.load %arg8[%c4, %c0_16] : memref<8x128xf32, #tpu.memory_space<vmem>>, vector<1x128xf32>
    %c5 = arith.constant 5 : index
    %c0_17 = arith.constant 0 : index
    %11 = vector.load %arg8[%c5, %c0_17] : memref<8x128xf32, #tpu.memory_space<vmem>>, vector<1x128xf32>
    %c0_18 = arith.constant 0 : index
    %c0_19 = arith.constant 0 : index
    %12 = vector.load %arg1[%c0_18, %c0_19] : memref<8x32xbf16, #tpu.memory_space<vmem>>, vector<8x32xbf16>
    %cst = arith.constant dense<0.000000e+00> : vector<8x128xf32>
    %13 = tpu.matmul %12, %0, %cst {dimension_numbers = #tpu.dot_dimension_numbers<[1], [0], [0], [1], [0, 0, 1, 1], [], []>} : vector<8x32xbf16>, vector<32x128xbf16>, vector<8x128xf32> -> vector<8x128xf32>
    %14 = vector.broadcast %6 : vector<1x128xf32> to vector<8x128xf32>
    %15 = arith.addf %13, %14 : vector<8x128xf32>
    %cst_20 = arith.constant 0.000000e+00 : f32
    %16 = vector.broadcast %cst_20 : f32 to vector<8x128xf32>
    %17 = arith.maximumf %15, %16 : vector<8x128xf32>
    %18 = arith.truncf %17 : vector<8x128xf32> to vector<8x128xbf16>
    %cst_21 = arith.constant dense<0.000000e+00> : vector<8x128xf32>
    %19 = tpu.matmul %18, %1, %cst_21 {dimension_numbers = #tpu.dot_dimension_numbers<[1], [0], [0], [1], [0, 0, 1, 1], [], []>} : vector<8x128xbf16>, vector<128x128xbf16>, vector<8x128xf32> -> vector<8x128xf32>
    %20 = vector.broadcast %7 : vector<1x128xf32> to vector<8x128xf32>
    %21 = arith.addf %19, %20 : vector<8x128xf32>
    %cst_22 = arith.constant 0.000000e+00 : f32
    %22 = vector.broadcast %cst_22 : f32 to vector<8x128xf32>
    %23 = arith.maximumf %21, %22 : vector<8x128xf32>
    %24 = arith.truncf %23 : vector<8x128xf32> to vector<8x128xbf16>
    %cst_23 = arith.constant dense<0.000000e+00> : vector<8x128xf32>
    %25 = tpu.matmul %24, %2, %cst_23 {dimension_numbers = #tpu.dot_dimension_numbers<[1], [0], [0], [1], [0, 0, 1, 1], [], []>} : vector<8x128xbf16>, vector<128x128xbf16>, vector<8x128xf32> -> vector<8x128xf32>
    %26 = vector.broadcast %8 : vector<1x128xf32> to vector<8x128xf32>
    %27 = arith.addf %25, %26 : vector<8x128xf32>
    %cst_24 = arith.constant 0.000000e+00 : f32
    %28 = vector.broadcast %cst_24 : f32 to vector<8x128xf32>
    %29 = arith.maximumf %27, %28 : vector<8x128xf32>
    %30 = arith.truncf %29 : vector<8x128xf32> to vector<8x128xbf16>
    %cst_25 = arith.constant dense<0.000000e+00> : vector<8x128xf32>
    %31 = tpu.matmul %30, %3, %cst_25 {dimension_numbers = #tpu.dot_dimension_numbers<[1], [0], [0], [1], [0, 0, 1, 1], [], []>} : vector<8x128xbf16>, vector<128x128xbf16>, vector<8x128xf32> -> vector<8x128xf32>
    %32 = vector.broadcast %9 : vector<1x128xf32> to vector<8x128xf32>
    %33 = arith.addf %31, %32 : vector<8x128xf32>
    %cst_26 = arith.constant 0.000000e+00 : f32
    %34 = vector.broadcast %cst_26 : f32 to vector<8x128xf32>
    %35 = arith.maximumf %33, %34 : vector<8x128xf32>
    %36 = arith.truncf %35 : vector<8x128xf32> to vector<8x128xbf16>
    %cst_27 = arith.constant dense<0.000000e+00> : vector<8x128xf32>
    %37 = tpu.matmul %36, %4, %cst_27 {dimension_numbers = #tpu.dot_dimension_numbers<[1], [0], [0], [1], [0, 0, 1, 1], [], []>} : vector<8x128xbf16>, vector<128x128xbf16>, vector<8x128xf32> -> vector<8x128xf32>
    %38 = vector.broadcast %10 : vector<1x128xf32> to vector<8x128xf32>
    %39 = arith.addf %37, %38 : vector<8x128xf32>
    %cst_28 = arith.constant 0.000000e+00 : f32
    %40 = vector.broadcast %cst_28 : f32 to vector<8x128xf32>
    %41 = arith.maximumf %39, %40 : vector<8x128xf32>
    %42 = arith.truncf %41 : vector<8x128xf32> to vector<8x128xbf16>
    %cst_29 = arith.constant dense<0.000000e+00> : vector<8x128xf32>
    %43 = tpu.matmul %42, %5, %cst_29 {dimension_numbers = #tpu.dot_dimension_numbers<[1], [0], [0], [1], [0, 0, 1, 1], [], []>} : vector<8x128xbf16>, vector<128x128xbf16>, vector<8x128xf32> -> vector<8x128xf32>
    %44 = vector.broadcast %11 : vector<1x128xf32> to vector<8x128xf32>
    %45 = arith.addf %43, %44 : vector<8x128xf32>
    %46 = math.tanh %45 : vector<8x128xf32>
    %47 = arith.truncf %46 : vector<8x128xf32> to vector<8x128xbf16>
    %c0_30 = arith.constant 0 : index
    %c0_31 = arith.constant 0 : index
    %48 = vector.load %arg9[%c0_30, %c0_31] : memref<8x128xbf16, #tpu.memory_space<vmem>>, vector<8x128xbf16>
    tpu.vector_store %arg9[%c0_30, %c0_31], %47 {strides = array<i32>} : memref<8x128xbf16, #tpu.memory_space<vmem>>, vector<8x128xbf16>,
    return
  }
  func.func @transform_0(%arg0: i32) -> (i32, i32) {
    %c0_i32 = arith.constant 0 : i32
    %c0_i32_0 = arith.constant 0 : i32
    return %arg0, %c0_i32 : i32, i32
  }
  func.func @transform_1(%arg0: i32) -> (i32, i32) {
    %c0_i32 = arith.constant 0 : i32
    %c0_i32_0 = arith.constant 0 : i32
    %c0_i32_1 = arith.constant 0 : i32
    return %c0_i32, %c0_i32_0 : i32, i32
  }
  func.func @transform_2(%arg0: i32) -> (i32, i32) {
    %c0_i32 = arith.constant 0 : i32
    %c0_i32_0 = arith.constant 0 : i32
    %c0_i32_1 = arith.constant 0 : i32
    return %c0_i32, %c0_i32_0 : i32, i32
  }
  func.func @transform_3(%arg0: i32) -> (i32, i32) {
    %c0_i32 = arith.constant 0 : i32
    %c0_i32_0 = arith.constant 0 : i32
    %c0_i32_1 = arith.constant 0 : i32
    return %c0_i32, %c0_i32_0 : i32, i32
  }
  func.func @transform_4(%arg0: i32) -> (i32, i32) {
    %c0_i32 = arith.constant 0 : i32
    %c0_i32_0 = arith.constant 0 : i32
    %c0_i32_1 = arith.constant 0 : i32
    return %c0_i32, %c0_i32_0 : i32, i32
  }
  func.func @transform_5(%arg0: i32) -> (i32, i32) {
    %c0_i32 = arith.constant 0 : i32
    %c0_i32_0 = arith.constant 0 : i32
    %c0_i32_1 = arith.constant 0 : i32
    return %c0_i32, %c0_i32_0 : i32, i32
  }
  func.func @transform_6(%arg0: i32) -> (i32, i32) {
    %c0_i32 = arith.constant 0 : i32
    %c0_i32_0 = arith.constant 0 : i32
    %c0_i32_1 = arith.constant 0 : i32
    return %c0_i32, %c0_i32_0 : i32, i32
  }
  func.func @transform_7(%arg0: i32) -> (i32, i32) {
    %c0_i32 = arith.constant 0 : i32
    %c0_i32_0 = arith.constant 0 : i32
    %c0_i32_1 = arith.constant 0 : i32
    return %c0_i32, %c0_i32_0 : i32, i32
  }
  func.func @transform_8(%arg0: i32) -> (i32, i32) {
    %c0_i32 = arith.constant 0 : i32
    %c0_i32_0 = arith.constant 0 : i32
    return %arg0, %c0_i32 : i32, i32
  }
}

</mosaic_0001>

<bundles_post_ra>
// kernel: tpu_custom_call.1
= control target key start
LH: loop header
LB: loop body
LE: loop exit
PB: predicated region body
PF: predicated region fallthrough
CT: control target
= control target key end

     0   :  { %13 = vsyncpa [#allocation3], 0  ;;  %s1456_s0 = inlined_call_operand.hbm [shape: bf16[8,32], index: 0, kind: input, shape index: {}]   ;;  %s1457_s1 = inlined_call_operand.hbm [shape: bf16[32,128], index: 1, kind: input, shape index: {}]   ;;  %s1458_s2 = inlined_call_operand.hbm [shape: bf16[128,128], index: 2, kind: input, shape index: {}]   ;;  %s1459_s3 = inlined_call_operand.hbm [shape: bf16[128,128], index: 3, kind: input, shape index: {}]   ;;  %s1460_s4 = inlined_call_operand.hbm [shape: bf16[128,128], index: 4, kind: input, shape index: {}]   ;;  %s1461_s5 = inlined_call_operand.hbm [shape: bf16[128,128], index: 5, kind: input, shape index: {}]   ;;  %s1462_s6 = inlined_call_operand.hbm [shape: bf16[128,128], index: 6, kind: input, shape index: {}]   ;;  %s1463_s7 = inlined_call_operand.vmem [shape: f32[8,128], index: 7, kind: input, shape index: {}]   ;;  %s1464_s8 = inlined_call_operand.hbm [shape: bf16[8,128], index: 8, kind: output, shape index: {}]  }
   0x1   :  { %14 = vsyncpa [#allocation6], 0 }
   0x2   :  { %15 = vsyncpa [#allocation9], 0 }
   0x3   :  { %16 = vsyncpa [#allocation12], 0 }
   0x4   :  { %17 = vsyncpa [#allocation4], 0  ;;  %s1213_s27 = smov [#allocation5]   ;;  %s1027_s9 = scalar_lea.hbm %s1457_s1, 256 }
   0x5   :  { %s33_s28 = sshll.u32 %s1213_s27, 4  ;;  %p1028_p0 = scmp.ne.s32.totalorder %s1457_s1, %s1027_s9  ;;  %s34_s28 = int_to_ptr.vmem [resolvable:$true] %s33_s28 }
   0x6   :  { %p1031_p1 = scmp.lt.u32.totalorder %s1027_s9, %s1457_s1 }
   0x8   :  { %p1033_p2 = pnand %p1031_p1, %p1028_p0 }
   0xa   :  { %1036 = shalt.err (!%p1033_p2)
}
   0xb   :  { %s1037_s14 = scalar_lea.vmem %s34_s28, 256  ;;  %p1042_p4 = scmp.lt.s32.totalorder %s34_s28, %s34_s28 }
   0xc   :  { %p1038_p3 = scmp.ne.s32.totalorder %s34_s28, %s1037_s14  ;;  %p1043_p5 = scmp.lt.s32.totalorder %s1037_s14, %s1037_s14 }
   0xe   :  { %p1044_p6 = por %p1043_p5, %p1042_p4 }
  0x10   :  { %p1045_p7 = pnand %p1044_p6, %p1038_p3 }
  0x12   :  { %1048 = shalt.err (!%p1045_p7)
}
  0x13   :  { %s1214_s15 = smov 64   ;;  %s1215_s16 = smov 4  }
  0x14   :  { %39 = dma.hbm_to_vmem [thread:$0]  %s1457_s1, 256, %s34_s28, [#allocation6], %s1214_s15, %s1214_s15, %s1215_s16  }
  0x15   :  { %s1216_s19 = smov [#allocation8]   ;;  %s1217_s21 = smov [#allocation11]  }
  0x16   :  { %s57_s20 = sshll.u32 %s1216_s19, 4  ;;  %s81_s22 = sshll.u32 %s1217_s21, 4  ;;  %s58_s20 = int_to_ptr.vmem [resolvable:$true] %s57_s20  ;;  %s82_s22 = int_to_ptr.vmem [resolvable:$true] %s81_s22 }
  0x17   :  { %s1049_s25 = scalar_lea.hbm %s1459_s3, 1024 }
  0x18   :  { %p1050_p8 = scmp.ne.s32.totalorder %s1459_s3, %s1049_s25  ;;  %p1053_p9 = scmp.lt.u32.totalorder %s1049_s25, %s1459_s3 }
  0x1a   :  { %p1055_p10 = pnand %p1053_p9, %p1050_p8 }
  0x1c   :  { %1058 = shalt.err (!%p1055_p10)
}
  0x1d   :  { %s1059_s1 = scalar_lea.vmem %s58_s20, 1024  ;;  %p1064_p12 = scmp.lt.s32.totalorder %s58_s20, %s58_s20 }
  0x1e   :  { %p1060_p11 = scmp.ne.s32.totalorder %s58_s20, %s1059_s1  ;;  %p1065_p13 = scmp.lt.s32.totalorder %s1059_s1, %s1059_s1 }
  0x20   :  { %p1066_p0 = por %p1065_p13, %p1064_p12 }
  0x22   :  { %p1067_p1 = pnand %p1066_p0, %p1060_p11 }
  0x24   :  { %1070 = shalt.err (!%p1067_p1)
}
  0x25   :  { %63 = dma.hbm_to_vmem [thread:$0]  %s1459_s3, 1024, %s58_s20, [#allocation9], %s1214_s15, %s1214_s15, %s1215_s16  }
  0x26   :  { %s1071_s12 = scalar_lea.hbm %s1461_s5, 1024 }
  0x27   :  { %p1072_p2 = scmp.ne.s32.totalorder %s1461_s5, %s1071_s12  ;;  %p1075_p3 = scmp.lt.u32.totalorder %s1071_s12, %s1461_s5 }
  0x29   :  { %p1077_p4 = pnand %p1075_p3, %p1072_p2 }
  0x2b   :  { %1080 = shalt.err (!%p1077_p4)
}
  0x2c   :  { %s1081_s19 = scalar_lea.vmem %s82_s22, 1024  ;;  %p1086_p6 = scmp.lt.s32.totalorder %s82_s22, %s82_s22 }
  0x2d   :  { %p1082_p5 = scmp.ne.s32.totalorder %s82_s22, %s1081_s19  ;;  %p1087_p7 = scmp.lt.s32.totalorder %s1081_s19, %s1081_s19 }
  0x2f   :  { %p1088_p8 = por %p1087_p7, %p1086_p6 }
  0x31   :  { %p1089_p9 = pnand %p1088_p8, %p1082_p5 }
  0x33   :  { %1092 = shalt.err (!%p1089_p9)
}
  0x34   :  { %87 = dma.hbm_to_vmem [thread:$0]  %s1461_s5, 1024, %s82_s22, [#allocation12], %s1214_s15, %s1214_s15, %s1215_s16  }
  0x35   :  { %s1218_s21 = smov [#allocation2]   ;;  %s1219_s24 = smov [#allocation7]  }
  0x36   :  { %s24_s23 = sshll.u32 %s1218_s21, 4  ;;  %s45_s25 = sshll.u32 %s1219_s24, 4  ;;  %s25_s23 = int_to_ptr.vmem [resolvable:$true] %s24_s23  ;;  %s46_s25 = int_to_ptr.vmem [resolvable:$true] %s45_s25 }
  0x37   :  { %s1093_s29 = scalar_lea.hbm %s1456_s0, 64 }
  0x38   :  { %p1094_p10 = scmp.ne.s32.totalorder %s1456_s0, %s1093_s29  ;;  %p1097_p11 = scmp.lt.u32.totalorder %s1093_s29, %s1456_s0 }
  0x3a   :  { %p1099_p12 = pnand %p1097_p11, %p1094_p10 }
  0x3c   :  { %1102 = shalt.err (!%p1099_p12)
}
  0x3d   :  { %s1103_s5 = scalar_lea.vmem %s25_s23, 64  ;;  %p1108_p0 = scmp.lt.s32.totalorder %s25_s23, %s25_s23 }
  0x3e   :  { %p1104_p13 = scmp.ne.s32.totalorder %s25_s23, %s1103_s5  ;;  %p1109_p1 = scmp.lt.s32.totalorder %s1103_s5, %s1103_s5 }
  0x40   :  { %p1110_p2 = por %p1109_p1, %p1108_p0 }
  0x42   :  { %p1111_p3 = pnand %p1110_p2, %p1104_p13 }
  0x44   :  { %1114 = shalt.err (!%p1111_p3)
}
  0x45   :  { %27 = dma.hbm_to_vmem [thread:$0]  %s1456_s0, 64, %s25_s23, [#allocation3]  }
  0x46   :  { %s1115_s13 = scalar_lea.hbm %s1458_s2, 1024 }
  0x47   :  { %p1116_p4 = scmp.ne.s32.totalorder %s1458_s2, %s1115_s13  ;;  %p1119_p5 = scmp.lt.u32.totalorder %s1115_s13, %s1458_s2 }
  0x49   :  { %p1121_p6 = pnand %p1119_p5, %p1116_p4 }
  0x4b   :  { %1124 = shalt.err (!%p1121_p6)
}
  0x4c   :  { %s1125_s3 = scalar_lea.vmem %s46_s25, 1024  ;;  %p1130_p8 = scmp.lt.s32.totalorder %s46_s25, %s46_s25 }
  0x4d   :  { %p1126_p7 = scmp.ne.s32.totalorder %s46_s25, %s1125_s3  ;;  %p1131_p9 = scmp.lt.s32.totalorder %s1125_s3, %s1125_s3 }
  0x4f   :  { %p1132_p10 = por %p1131_p9, %p1130_p8 }
  0x51   :  { %p1133_p11 = pnand %p1132_p10, %p1126_p7 }
  0x53   :  { %1136 = shalt.err (!%p1133_p11)
}
  0x54   :  { %51 = dma.hbm_to_vmem [thread:$0]  %s1458_s2, 1024, %s46_s25, [#allocation6], %s1214_s15, %s1214_s15, %s1215_s16  }
  0x55   :  { %s1220_s21 = smov [#allocation10]   ;;  %s1221_s24 = smov [#allocation13]  }
  0x56   :  { %s69_s23 = sshll.u32 %s1220_s21, 4  ;;  %s93_s26 = sshll.u32 %s1221_s24, 4  ;;  %s70_s23 = int_to_ptr.vmem [resolvable:$true] %s69_s23  ;;  %s94_s26 = int_to_ptr.vmem [resolvable:$true] %s93_s26 }
  0x57   :  { %s1137_s30 = scalar_lea.hbm %s1460_s4, 1024 }
  0x58   :  { %p1138_p12 = scmp.ne.s32.totalorder %s1460_s4, %s1137_s30  ;;  %p1141_p13 = scmp.lt.u32.totalorder %s1137_s30, %s1460_s4 }
  0x5a   :  { %p1143_p0 = pnand %p1141_p13, %p1138_p12 }
  0x5c   :  { %1146 = shalt.err (!%p1143_p0)
}
  0x5d   :  { %s1147_s2 = scalar_lea.vmem %s70_s23, 1024  ;;  %p1152_p2 = scmp.lt.s32.totalorder %s70_s23, %s70_s23 }
  0x5e   :  { %p1148_p1 = scmp.ne.s32.totalorder %s70_s23, %s1147_s2  ;;  %p1153_p3 = scmp.lt.s32.totalorder %s1147_s2, %s1147_s2 }
  0x60   :  { %p1154_p4 = por %p1153_p3, %p1152_p2 }
  0x62   :  { %p1155_p5 = pnand %p1154_p4, %p1148_p1 }
  0x64   :  { %1158 = shalt.err (!%p1155_p5)
}
  0x65   :  { %75 = dma.hbm_to_vmem [thread:$0]  %s1460_s4, 1024, %s70_s23, [#allocation9], %s1214_s15, %s1214_s15, %s1215_s16  }
  0x66   :  { %s1159_s12 = scalar_lea.hbm %s1462_s6, 1024 }
  0x67   :  { %p1160_p6 = scmp.ne.s32.totalorder %s1462_s6, %s1159_s12  ;;  %p1163_p7 = scmp.lt.u32.totalorder %s1159_s12, %s1462_s6 }
  0x69   :  { %p1165_p8 = pnand %p1163_p7, %p1160_p6 }
  0x6b   :  { %1168 = shalt.err (!%p1165_p8)
}
  0x6c   :  { %s1169_s19 = scalar_lea.vmem %s94_s26, 1024  ;;  %p1174_p10 = scmp.lt.s32.totalorder %s94_s26, %s94_s26 }
  0x6d   :  { %p1170_p9 = scmp.ne.s32.totalorder %s94_s26, %s1169_s19  ;;  %p1175_p11 = scmp.lt.s32.totalorder %s1169_s19, %s1169_s19 }
  0x6f   :  { %p1176_p12 = por %p1175_p11, %p1174_p10 }
  0x71   :  { %p1177_p13 = pnand %p1176_p12, %p1170_p9 }
  0x73   :  { %1180 = shalt.err (!%p1177_p13)
}
  0x74   :  { %99 = dma.hbm_to_vmem [thread:$0]  %s1462_s6, 1024, %s94_s26, [#allocation12], %s1214_s15, %s1214_s15, %s1215_s16  }
  0x75   :  { %1203 = dma.done.wait [#allocation3], 64  }
  0x76   :  { %1204 = vsyncadd [#allocation3], 4294967232 }
  0x77   :  { %1205 = dma.done.wait [#allocation6], 1280  }
  0x78   :  { %1206 = vsyncadd [#allocation6], 4294966016 }
  0x79   :  { %1207 = dma.done.wait [#allocation9], 2048  }
  0x7a   :  { %1208 = vsyncadd [#allocation9], 4294965248 }
  0x7b   :  { %1209 = dma.done.wait [#allocation12], 2048  }
  0x7c   :  { %1210 = vsyncadd [#allocation12], 4294965248  ;;  %v1222_v0 = vmov 0.0   ;;  %vm1223_vm0 = vmmov 0   ;;  %v983_v1 = vld [vmem:[#allocation5] sm:$0xff]   ;;  %v984_v2 = vld [vmem:[#allocation5 + $0x8] sm:$0xff]  }
  0x7d   :  { %863 = vmatprep.subr.bf16.mxu0 %v1222_v0  ;;  %867 = vmatprep.mubr.msk.bf16.mxu0 %vm1223_vm0, %v1222_v0  ;;  %v985_v3 = vld [vmem:[#allocation7] sm:$0xff]   ;;  %vm231_vm1 = vcmask 261120   ;;  %v986_v4 = vld [vmem:[#allocation7 + $0x8] sm:$0xff]   ;;  %v987_v6 = vld [vmem:[#allocation7 + $0x10] sm:$0xff]   ;;  %s1224_s1 = smov [#allocation14]  }
  0x7e   :  { %871 = vmatprep.subr.bf16.mxu1 %v1222_v0  ;;  %887 = vmatprep.mubr.msk.bf16.mxu1 %vm1223_vm0, %v1222_v0  ;;  %v214_v5 = vld [vmem:[#allocation2] sm:$0xf]  ;;  %v988_v7 = vld [vmem:[#allocation7 + $0x18] sm:$0xff]   ;;  %v989_v8 = vld [vmem:[#allocation7 + $0x20] sm:$0xff]   ;;  %s754_s28 = sshll.u32 %s1224_s1, 4  ;;  %s755_s28 = int_to_ptr.vmem [resolvable:$true] %s754_s28 }
  0x7f   :  { %864 = vmatpush3.bf16.msra.mxu0 %v983_v1  ;;  %872 = vmatpush3.bf16.msra.mxu1 %v985_v3  ;;  %v990_v9 = vld [vmem:[#allocation7 + $0x28] sm:$0xff]   ;;  %v991_v10 = vld [vmem:[#allocation7 + $0x30] sm:$0xff]   ;;  %v992_v11 = vld [vmem:[#allocation7 + $0x38] sm:$0xff]   ;;  %s1181_s9 = scalar_lea.vmem %s755_s28, 64  ;;  %p1186_p1 = scmp.lt.s32.totalorder %s755_s28, %s755_s28 }
  0x80   :  { %865 = vmatprep.subr.bf16.mxu0 %v1222_v0  ;;  %873 = vmatprep.subr.bf16.mxu1 %v1222_v0  ;;  %v993_v12 = vld [vmem:[#allocation8] sm:$0xff]   ;;  %v994_v13 = vld [vmem:[#allocation8 + $0x8] sm:$0xff]   ;;  %v995_v14 = vld [vmem:[#allocation8 + $0x10] sm:$0xff]   ;;  %p1182_p0 = scmp.ne.s32.totalorder %s755_s28, %s1181_s9  ;;  %p1187_p2 = scmp.lt.s32.totalorder %s1181_s9, %s1181_s9 }
  0x81   :  { %v996_v15 = vld [vmem:[#allocation8 + $0x18] sm:$0xff]   ;;  %v997_v16 = vld [vmem:[#allocation8 + $0x20] sm:$0xff]   ;;  %v998_v17 = vld [vmem:[#allocation8 + $0x28] sm:$0xff]  }
  0x82   :  { %v766_v18 = vld [vmem:[%s1463_s7] ss:$0 sm:$0xff]  ;;  %v999_v26 = vld [vmem:[#allocation8 + $0x30] sm:$0xff]   ;;  %v1000_v27 = vld [vmem:[#allocation8 + $0x38] sm:$0xff]   ;;  %p1188_p3 = por %p1187_p2, %p1186_p1 }
  0x83   :  { %866 = vmatpush3.bf16.msra.mxu0 %v984_v2  ;;  %874 = vmatpush3.bf16.msra.mxu1 %v986_v4  ;;  %v1001_v28 = vld [vmem:[#allocation10] sm:$0xff]   ;;  %v1002_v29 = vld [vmem:[#allocation10 + $0x8] sm:$0xff]   ;;  %v1003_v30 = vld [vmem:[#allocation10 + $0x10] sm:$0xff]  }
  0x84   :  { %891 = vmatprep.subr.bf16.mxu0 %v1222_v0  ;;  %875 = vmatprep.subr.bf16.mxu1 %v1222_v0  ;;  %v1004_v31 = vld [vmem:[#allocation10 + $0x18] sm:$0xff]   ;;  %v1005_v32 = vld [vmem:[#allocation10 + $0x20] sm:$0xff]   ;;  %v1006_v33 = vld [vmem:[#allocation10 + $0x28] sm:$0xff]   ;;  %p1189_p4 = pnand %p1188_p3, %p1182_p0 }
  0x85   :  { %v770_v34 = vld [vmem:[%s1463_s7 + $0x1] ss:$0 sm:$0xff]  ;;  %v1007_v42 = vld [vmem:[#allocation10 + $0x30] sm:$0xff]   ;;  %v1008_v43 = vld [vmem:[#allocation10 + $0x38] sm:$0xff]  }
  0x86   :  { %868 = vmatmul.mubr.msk.bf16.vlgmr.msra.gmra.mrb[0].mxu0 %vm231_vm1, %v214_v5  ;;  %v1009_v44 = vld [vmem:[#allocation11] sm:$0xff]   ;;  %v1010_v45 = vld [vmem:[#allocation11 + $0x8] sm:$0xff]   ;;  %v1011_v46 = vld [vmem:[#allocation11 + $0x10] sm:$0xff]  }
  0x87   :  { %907 = vmatprep.mubr.msk.bf16.mxu0 %vm1223_vm0, %v1222_v0  ;;  %876 = vmatpush3.bf16.msra.mxu1 %v987_v6  ;;  %v1012_v47 = vld [vmem:[#allocation11 + $0x18] sm:$0xff]   ;;  %v1013_v48 = vld [vmem:[#allocation11 + $0x20] sm:$0xff]   ;;  %v1014_v49 = vld [vmem:[#allocation11 + $0x28] sm:$0xff]  }
  0x88   :  { %877 = vmatprep.subr.bf16.mxu1 %v1222_v0  ;;  %892 = vmatpush3.bf16.msra.mxu0 %v993_v12  ;;  %v779_v50 = vld [vmem:[%s1463_s7 + $0x2] ss:$0 sm:$0xff]  ;;  %v1015_v58 = vld [vmem:[#allocation11 + $0x30] sm:$0xff]   ;;  %v1016_v59 = vld [vmem:[#allocation11 + $0x38] sm:$0xff]  }
  0x89   :  { %893 = vmatprep.subr.bf16.mxu0 %v1222_v0  ;;  %v1017_v60 = vld [vmem:[#allocation13] sm:$0xff]   ;;  %v1018_v61 = vld [vmem:[#allocation13 + $0x8] sm:$0xff]   ;;  %v1019_v62 = vld [vmem:[#allocation13 + $0x10] sm:$0xff]  }
  0x8a   :  { %v1020_v63 = vld [vmem:[#allocation13 + $0x18] sm:$0xff]   ;;  %v1021_v1 = vld [vmem:[#allocation13 + $0x20] sm:$0xff]   ;;  %v1022_v2 = vld [vmem:[#allocation13 + $0x28] sm:$0xff]  }
  0x8b   :  { %878 = vmatpush3.bf16.msra.mxu1 %v988_v7  ;;  %v788_v3 = vld [vmem:[%s1463_s7 + $0x3] ss:$0 sm:$0xff]  ;;  %v1024_v12 = vld [vmem:[#allocation13 + $0x38] sm:$0xff]  }
  0x8c   :  { %879 = vmatprep.subr.bf16.mxu1 %v1222_v0  ;;  %894 = vmatpush3.bf16.msra.mxu0 %v994_v13  ;;  %v797_v13 = vld [vmem:[%s1463_s7 + $0x4] ss:$0 sm:$0xff] }
  0x8d   :  { %895 = vmatprep.subr.bf16.mxu0 %v1222_v0 }
  0x8f   :  { %880 = vmatpush3.bf16.msra.mxu1 %v989_v8 }
  0x90   :  { %881 = vmatprep.subr.bf16.mxu1 %v1222_v0  ;;  %896 = vmatpush3.bf16.msra.mxu0 %v995_v14 }
  0x91   :  { %897 = vmatprep.subr.bf16.mxu0 %v1222_v0 }
  0x93   :  { %882 = vmatpush3.bf16.msra.mxu1 %v990_v9 }
  0x94   :  { %883 = vmatprep.subr.bf16.mxu1 %v1222_v0  ;;  %898 = vmatpush3.bf16.msra.mxu0 %v996_v15 }
  0x95   :  { %899 = vmatprep.subr.bf16.mxu0 %v1222_v0 }
  0x97   :  { %884 = vmatpush3.bf16.msra.mxu1 %v991_v10 }
  0x98   :  { %885 = vmatprep.subr.bf16.mxu1 %v1222_v0  ;;  %900 = vmatpush3.bf16.msra.mxu0 %v997_v16 }
  0x99   :  { %901 = vmatprep.subr.bf16.mxu0 %v1222_v0 }
  0x9b   :  { %886 = vmatpush3.bf16.msra.mxu1 %v992_v11  ;;  %v1023_v11 = vld [vmem:[#allocation13 + $0x30] sm:$0xff]  }
  0x9c   :  { %911 = vmatprep.subr.bf16.mxu1 %v1222_v0  ;;  %902 = vmatpush3.bf16.msra.mxu0 %v998_v17 }
  0x9d   :  { %903 = vmatprep.subr.bf16.mxu0 %v1222_v0 }
  0xa0   :  { %904 = vmatpush3.bf16.msra.mxu0 %v999_v26 }
  0xa1   :  { %905 = vmatprep.subr.bf16.mxu0 %v1222_v0 }
  0xa4   :  { %906 = vmatpush3.bf16.msra.mxu0 %v1000_v27 }
  0xa5   :  { %931 = vmatprep.subr.bf16.mxu0 %v1222_v0 }
 0x159   :  { %v269_v19 = vpop.f32.mrb[0].mxu0 }
 0x15a   :  { %v270_v20 = vadd.f32 %v766_v18, %v269_v19  ;;  %v869_v21 = vpop.f32.mrb[1].mxu0 }
 0x15b   :  { %v272_v22 = vpop.f32.mrb[2].mxu0  ;;  %v806_v21 = vld [vmem:[%s1463_s7 + $0x5] ss:$0 sm:$0xff] }
 0x15c   :  { %v275_v23 = vmax.f32 %v270_v20, 0.0  ;;  %v870_v24 = vpop.f32.mrb[3].mxu0 }
 0x15e   :  { %v276_v25 = vpack.c.bf16 %v275_v23, %v275_v23 }
 0x160   :  { %888 = vmatmul.mubr.bf16.vlgmr.msra.gmra.mrb[0].mxu1 %v276_v25 }
 0x161   :  { %927 = vmatprep.mubr.msk.bf16.mxu1 %vm1223_vm0, %v1222_v0  ;;  %912 = vmatpush3.bf16.msra.mxu1 %v1001_v28 }
 0x162   :  { %913 = vmatprep.subr.bf16.mxu1 %v1222_v0 }
 0x165   :  { %914 = vmatpush3.bf16.msra.mxu1 %v1002_v29 }
 0x166   :  { %915 = vmatprep.subr.bf16.mxu1 %v1222_v0 }
 0x169   :  { %916 = vmatpush3.bf16.msra.mxu1 %v1003_v30 }
 0x16a   :  { %917 = vmatprep.subr.bf16.mxu1 %v1222_v0 }
 0x16d   :  { %918 = vmatpush3.bf16.msra.mxu1 %v1004_v31 }
 0x16e   :  { %919 = vmatprep.subr.bf16.mxu1 %v1222_v0 }
 0x171   :  { %920 = vmatpush3.bf16.msra.mxu1 %v1005_v32 }
 0x172   :  { %921 = vmatprep.subr.bf16.mxu1 %v1222_v0 }
 0x175   :  { %922 = vmatpush3.bf16.msra.mxu1 %v1006_v33 }
 0x176   :  { %923 = vmatprep.subr.bf16.mxu1 %v1222_v0 }
 0x179   :  { %924 = vmatpush3.bf16.msra.mxu1 %v1007_v42 }
 0x17a   :  { %925 = vmatprep.subr.bf16.mxu1 %v1222_v0 }
 0x17d   :  { %926 = vmatpush3.bf16.msra.mxu1 %v1008_v43 }
 0x17e   :  { %951 = vmatprep.subr.bf16.mxu1 %v1222_v0 }
 0x233   :  { %v363_v35 = vpop.f32.mrb[0].mxu1 }
 0x234   :  { %v364_v36 = vadd.f32 %v770_v34, %v363_v35  ;;  %v889_v37 = vpop.f32.mrb[1].mxu1 }
 0x235   :  { %v366_v38 = vpop.f32.mrb[2].mxu1 }
 0x236   :  { %v369_v39 = vmax.f32 %v364_v36, 0.0  ;;  %v890_v40 = vpop.f32.mrb[3].mxu1 }
 0x238   :  { %v370_v41 = vpack.c.bf16 %v369_v39, %v369_v39 }
 0x23a   :  { %908 = vmatmul.mubr.bf16.vlgmr.msra.gmra.mrb[4].mxu0 %v370_v41 }
 0x23b   :  { %947 = vmatprep.mubr.msk.bf16.mxu0 %vm1223_vm0, %v1222_v0  ;;  %932 = vmatpush3.bf16.msra.mxu0 %v1009_v44 }
 0x23c   :  { %933 = vmatprep.subr.bf16.mxu0 %v1222_v0 }
 0x23f   :  { %934 = vmatpush3.bf16.msra.mxu0 %v1010_v45 }
 0x240   :  { %935 = vmatprep.subr.bf16.mxu0 %v1222_v0 }
 0x243   :  { %936 = vmatpush3.bf16.msra.mxu0 %v1011_v46 }
 0x244   :  { %937 = vmatprep.subr.bf16.mxu0 %v1222_v0 }
 0x247   :  { %938 = vmatpush3.bf16.msra.mxu0 %v1012_v47 }
 0x248   :  { %939 = vmatprep.subr.bf16.mxu0 %v1222_v0 }
 0x24b   :  { %940 = vmatpush3.bf16.msra.mxu0 %v1013_v48 }
 0x24c   :  { %941 = vmatprep.subr.bf16.mxu0 %v1222_v0 }
 0x24f   :  { %942 = vmatpush3.bf16.msra.mxu0 %v1014_v49 }
 0x250   :  { %943 = vmatprep.subr.bf16.mxu0 %v1222_v0 }
 0x253   :  { %944 = vmatpush3.bf16.msra.mxu0 %v1015_v58 }
 0x254   :  { %945 = vmatprep.subr.bf16.mxu0 %v1222_v0 }
 0x257   :  { %946 = vmatpush3.bf16.msra.mxu0 %v1016_v59 }
 0x30d   :  { %v457_v51 = vpop.f32.mrb[4].mxu0 }
 0x30e   :  { %v458_v52 = vadd.f32 %v779_v50, %v457_v51  ;;  %v909_v53 = vpop.f32.mrb[5].mxu0 }
 0x30f   :  { %v460_v54 = vpop.f32.mrb[6].mxu0 }
 0x310   :  { %v463_v55 = vmax.f32 %v458_v52, 0.0  ;;  %v910_v56 = vpop.f32.mrb[7].mxu0 }
 0x312   :  { %v464_v57 = vpack.c.bf16 %v463_v55, %v463_v55 }
 0x314   :  { %928 = vmatmul.mubr.bf16.vlgmr.msra.gmra.mrb[4].mxu1 %v464_v57 }
 0x315   :  { %967 = vmatprep.mubr.msk.bf16.mxu1 %vm1223_vm0, %v1222_v0  ;;  %952 = vmatpush3.bf16.msra.mxu1 %v1017_v60 }
 0x316   :  { %953 = vmatprep.subr.bf16.mxu1 %v1222_v0 }
 0x319   :  { %954 = vmatpush3.bf16.msra.mxu1 %v1018_v61 }
 0x31a   :  { %955 = vmatprep.subr.bf16.mxu1 %v1222_v0 }
 0x31d   :  { %956 = vmatpush3.bf16.msra.mxu1 %v1019_v62 }
 0x31e   :  { %957 = vmatprep.subr.bf16.mxu1 %v1222_v0 }
 0x321   :  { %958 = vmatpush3.bf16.msra.mxu1 %v1020_v63 }
 0x322   :  { %959 = vmatprep.subr.bf16.mxu1 %v1222_v0 }
 0x325   :  { %960 = vmatpush3.bf16.msra.mxu1 %v1021_v1 }
 0x326   :  { %961 = vmatprep.subr.bf16.mxu1 %v1222_v0 }
 0x329   :  { %962 = vmatpush3.bf16.msra.mxu1 %v1022_v2 }
 0x32a   :  { %963 = vmatprep.subr.bf16.mxu1 %v1222_v0 }
 0x32d   :  { %964 = vmatpush3.bf16.msra.mxu1 %v1023_v11 }
 0x32e   :  { %965 = vmatprep.subr.bf16.mxu1 %v1222_v0 }
 0x331   :  { %966 = vmatpush3.bf16.msra.mxu1 %v1024_v12 }
 0x3e7   :  { %v551_v4 = vpop.f32.mrb[4].mxu1 }
 0x3e8   :  { %v552_v5 = vadd.f32 %v788_v3, %v551_v4  ;;  %v929_v6 = vpop.f32.mrb[5].mxu1 }
 0x3e9   :  { %v554_v7 = vpop.f32.mrb[6].mxu1 }
 0x3ea   :  { %v557_v8 = vmax.f32 %v552_v5, 0.0  ;;  %v930_v9 = vpop.f32.mrb[7].mxu1 }
 0x3ec   :  { %v558_v10 = vpack.c.bf16 %v557_v8, %v557_v8 }
 0x3ee   :  { %948 = vmatmul.mubr.bf16.vlgmr.msra.gmra.mrb[8].mxu0 %v558_v10 }
 0x4c1   :  { %v645_v14 = vpop.f32.mrb[8].mxu0 }
 0x4c2   :  { %v646_v15 = vadd.f32 %v797_v13, %v645_v14  ;;  %v949_v16 = vpop.f32.mrb[9].mxu0 }
 0x4c3   :  { %v648_v17 = vpop.f32.mrb[10].mxu0 }
 0x4c4   :  { %v651_v18 = vmax.f32 %v646_v15, 0.0  ;;  %v950_v19 = vpop.f32.mrb[11].mxu0 }
 0x4c6   :  { %v652_v20 = vpack.c.bf16 %v651_v18, %v651_v18 }
 0x4c8   :  { %968 = vmatmul.mubr.bf16.vlgmr.msra.gmra.mrb[8].mxu1 %v652_v20 }
 0x59b   :  { %v739_v22 = vpop.f32.mrb[8].mxu1 }
 0x59c   :  { %v740_v0 = vadd.f32 %v806_v21, %v739_v22  ;;  %v969_v23 = vpop.f32.mrb[9].mxu1 }
 0x59d   :  { %v742_v24 = vpop.f32.mrb[10].mxu1 }
 0x59e   :  { %1025 = vtanh.f32 %v740_v0  ;;  %v970_v25 = vpop.f32.mrb[11].mxu1 }
 0x5a8   :  { %v1026_v26 = vpop.eup %1025 }
 0x5a9   :  { %v746_v27 = vpack.c.bf16 %v1026_v26, %v1026_v26 }
 0x5ab   :  { %747 = vst [vmem:[#allocation14] sm:$0xf] %v746_v27 }
 0x5ac   :  { %1192 = shalt.err (!%p1189_p4)
}
 0x5ad   :  { %s1193_s2 = scalar_lea.hbm %s1464_s8, 64 }
 0x5ae   :  { %p1194_p5 = scmp.ne.s32.totalorder %s1464_s8, %s1193_s2  ;;  %p1197_p6 = scmp.lt.u32.totalorder %s1193_s2, %s1464_s8 }
 0x5b0   :  { %p1199_p7 = pnand %p1197_p6, %p1194_p5 }
 0x5b2   :  { %1202 = shalt.err (!%p1199_p7)
}
 0x5b3   :  { %757 = dma.vmem_to_hbm [thread:$0]  %s755_s28, 64, %s1464_s8, [#allocation4]  }
 0x5b4   :  { %1211 = dma.done.wait [#allocation4], 64  }
 0x5b5   :  { %1212 = vsyncadd [#allocation4], 4294967232 }
 0x5b6   :  { %761 = vsyncpa [#allocation3], 1 }
 0x5b7   :  { %762 = vsyncpa [#allocation6], 1 }
 0x5b8   :  { %763 = vsyncpa [#allocation9], 1 }
 0x5b9   :  { %764 = vsyncpa [#allocation12], 1 }
 0x5ba   :  { %765 = vsyncpa [#allocation4], 1 }

</bundles_post_ra>
